<compile_context>
chip_gen: v7x
topology: tpu7x:2x2x1
jax: 0.10.0
libtpu: 0.0.40
codegen_flags: <defaults>
</compile_context>

<pallas_src>
import functools

import jax
import jax.numpy as jnp
from jax.experimental import pallas as pl
from jax.experimental.pallas import tpu as pltpu

LN_EPS = 1e-5


def _ffn_kernel(x_ref, w1t_ref, b1_ref, g1_ref, be1_ref,
                w2t_ref, b2_ref, g2_ref, be2_ref, o_ref, *, inv_d):
    # x_ref: (TM, Dp) tile of rows (possibly bf16); weights are pre-transposed
    # (in, out) and pre-cast; biases / LN params are f32 (1, Dp).
    x = x_ref[...]

    # ---- Linear 1: x @ W1^T + b1 (W1^T precomputed; f32 accumulation) ----
    h = jnp.dot(x, w1t_ref[...], preferred_element_type=jnp.float32)
    h = h + b1_ref[...]

    # ---- LayerNorm 1 (true divisor D; pad lanes of h are exactly 0) ----
    mu = jnp.sum(h, axis=-1, keepdims=True) * inv_d
    ex2 = jnp.sum(h * h, axis=-1, keepdims=True) * inv_d
    var = ex2 - mu * mu
    h = (h - mu) * jax.lax.rsqrt(var + LN_EPS)
    h = h * g1_ref[...] + be1_ref[...]          # gamma/beta pad lanes are 0

    # ---- ReLU ----
    h = jnp.maximum(h, 0.0)

    # ---- Linear 2 ----
    h2 = jnp.dot(h.astype(w2t_ref.dtype), w2t_ref[...],
                 preferred_element_type=jnp.float32)
    h2 = h2 + b2_ref[...]

    # ---- LayerNorm 2 ----
    mu = jnp.sum(h2, axis=-1, keepdims=True) * inv_d
    ex2 = jnp.sum(h2 * h2, axis=-1, keepdims=True) * inv_d
    var = ex2 - mu * mu
    h2 = (h2 - mu) * jax.lax.rsqrt(var + LN_EPS)
    h2 = h2 * g2_ref[...] + be2_ref[...]

    o_ref[...] = h2.astype(o_ref.dtype)


def _round_up(n, m):
    return ((n + m - 1) // m) * m


def ffn_forward(x, params, *, tile_rows=256, matmul_dtype=None):
    """x: (..., D) float array. Returns same shape/dtype as PyTorch FFN.forward.

    matmul_dtype: dtype fed to the MXU (e.g. jnp.bfloat16 on v6e/v7x for ~2x
    matmul throughput); accumulation and LayerNorm stay f32. Defaults to x.dtype.
    """
    w1, b1, g1, be1, w2, b2, g2, be2 = params
    orig_shape = x.shape
    orig_dtype = x.dtype
    D = orig_shape[-1]
    mm_dtype = orig_dtype if matmul_dtype is None else matmul_dtype

    # ---- Pad the feature dim to a lane-dense multiple of 128 ----
    Dp = _round_up(D, 128)
    dpad = Dp - D

    def pad_w_t(w):          # (out,in) -> transposed & padded (Dp, Dp)
        return jnp.pad(w.T, ((0, dpad), (0, dpad))).astype(mm_dtype)

    def pad_vec(v):          # (D,) -> (1, Dp), f32, pad lanes = 0
        return jnp.pad(v, (0, dpad)).astype(jnp.float32).reshape(1, Dp)

    w1t_p, w2t_p = pad_w_t(w1), pad_w_t(w2)
    b1_p, g1_p, be1_p = pad_vec(b1), pad_vec(g1), pad_vec(be1)
    b2_p, g2_p, be2_p = pad_vec(b2), pad_vec(g2), pad_vec(be2)

    # ---- Flatten + pad rows so the grid divides evenly ----
    x2d = x.reshape(-1, D)
    N = x2d.shape[0]
    tm = min(tile_rows, _round_up(N, 32))          # multiple of 32: ok for f32 & bf16
    row_pad = (-N) % tm
    x2d = jnp.pad(x2d, ((0, row_pad), (0, dpad))).astype(mm_dtype)
    Np = x2d.shape[0]

    x_spec = pl.BlockSpec((tm, Dp), lambda i: (i, 0))
    out_spec = pl.BlockSpec((tm, Dp), lambda i: (i, 0))
    full2d = lambda shape: pl.BlockSpec(shape, lambda i: (0, 0))

    kernel = functools.partial(_ffn_kernel, inv_d=1.0 / D)

    out = pl.pallas_call(
        kernel,
        out_shape=jax.ShapeDtypeStruct((Np, Dp), orig_dtype),
        grid_spec=pltpu.PrefetchScalarGridSpec(
            num_scalar_prefetch=0,
            grid=(Np // tm,),
            in_specs=[
                x_spec,                    # x tile
                full2d((Dp, Dp)),          # W1^T (pre-transposed, pre-cast)
                full2d((1, Dp)),           # b1
                full2d((1, Dp)),           # gamma1
                full2d((1, Dp)),           # beta1
                full2d((Dp, Dp)),          # W2^T
                full2d((1, Dp)),           # b2
                full2d((1, Dp)),           # gamma2
                full2d((1, Dp)),           # beta2
            ],
            out_specs=out_spec,
        ),
        compiler_params=pltpu.CompilerParams(
            dimension_semantics=("parallel",)),
    )(x2d, w1t_p, b1_p, g1_p, be1_p, w2t_p, b2_p, g2_p, be2_p)

    out = out[:N, :D]
    return out.reshape(orig_shape)


def init_ffn_params(key, state_size):
    """Deterministic init matching the shapes of the PyTorch module."""
    D = state_size
    k1, k2, k3, k4 = jax.random.split(key, 4)
    bound = 1.0 / jnp.sqrt(jnp.float32(D))
    w1 = jax.random.uniform(k1, (D, D), jnp.float32, -bound, bound)
    b1 = jax.random.uniform(k2, (D,), jnp.float32, -bound, bound)
    w2 = jax.random.uniform(k3, (D, D), jnp.float32, -bound, bound)
    b2 = jax.random.uniform(k4, (D,), jnp.float32, -bound, bound)
    g1 = jnp.ones((D,), jnp.float32)
    be1 = jnp.zeros((D,), jnp.float32)
    g2 = jnp.ones((D,), jnp.float32)
    be2 = jnp.zeros((D,), jnp.float32)
    return (w1, b1, g1, be1, w2, b2, g2, be2)


def _reference(x, params):
    """Pure-JAX reference for sanity checking."""
    w1, b1, g1, be1, w2, b2, g2, be2 = params

    def ln(h, g, b):
        mu = jnp.mean(h, axis=-1, keepdims=True)
        var = jnp.mean((h - mu) ** 2, axis=-1, keepdims=True)
        return (h - mu) / jnp.sqrt(var + LN_EPS) * g + b

    h = x @ w1.T + b1
    h = jnp.maximum(ln(h, g1, be1), 0.0)
    h = h @ w2.T + b2
    return ln(h, g2, be2)


if __name__ == "__main__":
    state_size = 32          # small stand-in for the default 200
    batch, seq = 2, 8
    key = jax.random.PRNGKey(0)
    kx, kp = jax.random.split(key)
    x = jax.random.normal(kx, (batch, seq, state_size), jnp.float32)
    params = init_ffn_params(kp, state_size)

    ref = _reference(x, params)

    # f32 matmul path (exact vs reference)
    out = jax.block_until_ready(ffn_forward(x, params))
    assert out.shape == x.shape and out.dtype == x.dtype
    assert jnp.allclose(out, ref, atol=1e-5, rtol=1e-5), "f32 mismatch vs reference"

    # bf16-into-MXU path (f32 accumulation / LayerNorm) — loose tolerance
    out_bf16 = jax.block_until_ready(
        ffn_forward(x, params, matmul_dtype=jnp.bfloat16))
    assert out_bf16.shape == x.shape and out_bf16.dtype == x.dtype
    assert jnp.allclose(out_bf16, ref, atol=2e-1, rtol=5e-2), "bf16 mismatch vs reference"

    print("KERNEL_OK")
</pallas_src>

<mosaic_0001>
module attributes {stable_mosaic.version = 11 : i64} {
  func.func @_ffn_kernel(%arg0: i32, %arg1: memref<32x128xf32, #tpu.memory_space<vmem>>, %arg2: memref<128x128xf32, #tpu.memory_space<vmem>>, %arg3: memref<1x128xf32, #tpu.memory_space<vmem>>, %arg4: memref<1x128xf32, #tpu.memory_space<vmem>>, %arg5: memref<1x128xf32, #tpu.memory_space<vmem>>, %arg6: memref<128x128xf32, #tpu.memory_space<vmem>>, %arg7: memref<1x128xf32, #tpu.memory_space<vmem>>, %arg8: memref<1x128xf32, #tpu.memory_space<vmem>>, %arg9: memref<1x128xf32, #tpu.memory_space<vmem>>, %arg10: memref<32x128xf32, #tpu.memory_space<vmem>>) attributes {dimension_semantics = [#tpu.dimension_semantics<parallel>], iteration_bounds = array<i64: 1>, scalar_prefetch = 0 : i64, scratch_operands = 0 : i64, tpu.core_type = #tpu.core_type<tc>, window_params = [{transform_indices = @transform_0, window_bounds = array<i64: 32, 128>}, {pipeline_mode = #tpu.pipeline_mode<synchronous>, transform_indices = @transform_1, window_bounds = array<i64: 128, 128>}, {pipeline_mode = #tpu.pipeline_mode<synchronous>, transform_indices = @transform_2, window_bounds = array<i64: 1, 128>}, {pipeline_mode = #tpu.pipeline_mode<synchronous>, transform_indices = @transform_3, window_bounds = array<i64: 1, 128>}, {pipeline_mode = #tpu.pipeline_mode<synchronous>, transform_indices = @transform_4, window_bounds = array<i64: 1, 128>}, {pipeline_mode = #tpu.pipeline_mode<synchronous>, transform_indices = @transform_5, window_bounds = array<i64: 128, 128>}, {pipeline_mode = #tpu.pipeline_mode<synchronous>, transform_indices = @transform_6, window_bounds = array<i64: 1, 128>}, {pipeline_mode = #tpu.pipeline_mode<synchronous>, transform_indices = @transform_7, window_bounds = array<i64: 1, 128>}, {pipeline_mode = #tpu.pipeline_mode<synchronous>, transform_indices = @transform_8, window_bounds = array<i64: 1, 128>}, {transform_indices = @transform_9, window_bounds = array<i64: 32, 128>}]} {
    %c0 = arith.constant 0 : index
    %c0_0 = arith.constant 0 : index
    %0 = vector.load %arg1[%c0, %c0_0] : memref<32x128xf32, #tpu.memory_space<vmem>>, vector<32x128xf32>
    %c0_1 = arith.constant 0 : index
    %c0_2 = arith.constant 0 : index
    %1 = vector.load %arg2[%c0_1, %c0_2] : memref<128x128xf32, #tpu.memory_space<vmem>>, vector<128x128xf32>
    %cst = arith.constant dense<0.000000e+00> : vector<32x128xf32>
    %2 = tpu.matmul %0, %1, %cst {dimension_numbers = #tpu.dot_dimension_numbers<[1], [0], [0], [1], [0, 0, 1, 1], [], []>} : vector<32x128xf32>, vector<128x128xf32>, vector<32x128xf32> -> vector<32x128xf32>
    %c0_3 = arith.constant 0 : index
    %c0_4 = arith.constant 0 : index
    %3 = vector.load %arg3[%c0_3, %c0_4] : memref<1x128xf32, #tpu.memory_space<vmem>>, vector<1x128xf32>
    %4 = vector.broadcast %3 : vector<1x128xf32> to vector<32x128xf32>
    %5 = arith.addf %2, %4 : vector<32x128xf32>
    %cst_5 = arith.constant dense<0.000000e+00> : vector<32xf32>
    %6 = vector.multi_reduction <add>, %5, %cst_5 [1] : vector<32x128xf32> to vector<32xf32>
    %7 = vector.shape_cast %6 : vector<32xf32> to vector<32x1xf32>
    %cst_6 = arith.constant 3.125000e-02 : f32
    %8 = vector.broadcast %cst_6 : f32 to vector<32x1xf32>
    %9 = arith.mulf %7, %8 : vector<32x1xf32>
    %10 = arith.mulf %5, %5 : vector<32x128xf32>
    %cst_7 = arith.constant dense<0.000000e+00> : vector<32xf32>
    %11 = vector.multi_reduction <add>, %10, %cst_7 [1] : vector<32x128xf32> to vector<32xf32>
    %12 = vector.shape_cast %11 : vector<32xf32> to vector<32x1xf32>
    %cst_8 = arith.constant 3.125000e-02 : f32
    %13 = vector.broadcast %cst_8 : f32 to vector<32x1xf32>
    %14 = arith.mulf %12, %13 : vector<32x1xf32>
    %15 = arith.mulf %9, %9 : vector<32x1xf32>
    %16 = arith.subf %14, %15 : vector<32x1xf32>
    %17 = vector.broadcast %9 : vector<32x1xf32> to vector<32x128xf32>
    %18 = arith.subf %5, %17 : vector<32x128xf32>
    %cst_9 = arith.constant 9.99999974E-6 : f32
    %19 = vector.broadcast %cst_9 : f32 to vector<32x1xf32>
    %20 = arith.addf %16, %19 : vector<32x1xf32>
    %21 = math.rsqrt %20 : vector<32x1xf32>
    %22 = vector.broadcast %21 : vector<32x1xf32> to vector<32x128xf32>
    %23 = arith.mulf %18, %22 : vector<32x128xf32>
    %c0_10 = arith.constant 0 : index
    %c0_11 = arith.constant 0 : index
    %24 = vector.load %arg4[%c0_10, %c0_11] : memref<1x128xf32, #tpu.memory_space<vmem>>, vector<1x128xf32>
    %25 = vector.broadcast %24 : vector<1x128xf32> to vector<32x128xf32>
    %26 = arith.mulf %23, %25 : vector<32x128xf32>
    %c0_12 = arith.constant 0 : index
    %c0_13 = arith.constant 0 : index
    %27 = vector.load %arg5[%c0_12, %c0_13] : memref<1x128xf32, #tpu.memory_space<vmem>>, vector<1x128xf32>
    %28 = vector.broadcast %27 : vector<1x128xf32> to vector<32x128xf32>
    %29 = arith.addf %26, %28 : vector<32x128xf32>
    %cst_14 = arith.constant 0.000000e+00 : f32
    %30 = vector.broadcast %cst_14 : f32 to vector<32x128xf32>
    %31 = arith.maximumf %29, %30 : vector<32x128xf32>
    %c0_15 = arith.constant 0 : index
    %c0_16 = arith.constant 0 : index
    %32 = vector.load %arg6[%c0_15, %c0_16] : memref<128x128xf32, #tpu.memory_space<vmem>>, vector<128x128xf32>
    %cst_17 = arith.constant dense<0.000000e+00> : vector<32x128xf32>
    %33 = tpu.matmul %31, %32, %cst_17 {dimension_numbers = #tpu.dot_dimension_numbers<[1], [0], [0], [1], [0, 0, 1, 1], [], []>} : vector<32x128xf32>, vector<128x128xf32>, vector<32x128xf32> -> vector<32x128xf32>
    %c0_18 = arith.constant 0 : index
    %c0_19 = arith.constant 0 : index
    %34 = vector.load %arg7[%c0_18, %c0_19] : memref<1x128xf32, #tpu.memory_space<vmem>>, vector<1x128xf32>
    %35 = vector.broadcast %34 : vector<1x128xf32> to vector<32x128xf32>
    %36 = arith.addf %33, %35 : vector<32x128xf32>
    %cst_20 = arith.constant dense<0.000000e+00> : vector<32xf32>
    %37 = vector.multi_reduction <add>, %36, %cst_20 [1] : vector<32x128xf32> to vector<32xf32>
    %38 = vector.shape_cast %37 : vector<32xf32> to vector<32x1xf32>
    %cst_21 = arith.constant 3.125000e-02 : f32
    %39 = vector.broadcast %cst_21 : f32 to vector<32x1xf32>
    %40 = arith.mulf %38, %39 : vector<32x1xf32>
    %41 = arith.mulf %36, %36 : vector<32x128xf32>
    %cst_22 = arith.constant dense<0.000000e+00> : vector<32xf32>
    %42 = vector.multi_reduction <add>, %41, %cst_22 [1] : vector<32x128xf32> to vector<32xf32>
    %43 = vector.shape_cast %42 : vector<32xf32> to vector<32x1xf32>
    %cst_23 = arith.constant 3.125000e-02 : f32
    %44 = vector.broadcast %cst_23 : f32 to vector<32x1xf32>
    %45 = arith.mulf %43, %44 : vector<32x1xf32>
    %46 = arith.mulf %40, %40 : vector<32x1xf32>
    %47 = arith.subf %45, %46 : vector<32x1xf32>
    %48 = vector.broadcast %40 : vector<32x1xf32> to vector<32x128xf32>
    %49 = arith.subf %36, %48 : vector<32x128xf32>
    %cst_24 = arith.constant 9.99999974E-6 : f32
    %50 = vector.broadcast %cst_24 : f32 to vector<32x1xf32>
    %51 = arith.addf %47, %50 : vector<32x1xf32>
    %52 = math.rsqrt %51 : vector<32x1xf32>
    %53 = vector.broadcast %52 : vector<32x1xf32> to vector<32x128xf32>
    %54 = arith.mulf %49, %53 : vector<32x128xf32>
    %c0_25 = arith.constant 0 : index
    %c0_26 = arith.constant 0 : index
    %55 = vector.load %arg8[%c0_25, %c0_26] : memref<1x128xf32, #tpu.memory_space<vmem>>, vector<1x128xf32>
    %56 = vector.broadcast %55 : vector<1x128xf32> to vector<32x128xf32>
    %57 = arith.mulf %54, %56 : vector<32x128xf32>
    %c0_27 = arith.constant 0 : index
    %c0_28 = arith.constant 0 : index
    %58 = vector.load %arg9[%c0_27, %c0_28] : memref<1x128xf32, #tpu.memory_space<vmem>>, vector<1x128xf32>
    %59 = vector.broadcast %58 : vector<1x128xf32> to vector<32x128xf32>
    %60 = arith.addf %57, %59 : vector<32x128xf32>
    %c0_29 = arith.constant 0 : index
    %c0_30 = arith.constant 0 : index
    %61 = vector.load %arg10[%c0_29, %c0_30] : memref<32x128xf32, #tpu.memory_space<vmem>>, vector<32x128xf32>
    tpu.vector_store %arg10[%c0_29, %c0_30], %60 {strides = array<i32>} : memref<32x128xf32, #tpu.memory_space<vmem>>, vector<32x128xf32>,
    return
  }
  func.func @transform_0(%arg0: i32) -> (i32, i32) {
    %c0_i32 = arith.constant 0 : i32
    %c0_i32_0 = arith.constant 0 : i32
    return %arg0, %c0_i32 : i32, i32
  }
  func.func @transform_1(%arg0: i32) -> (i32, i32) {
    %c0_i32 = arith.constant 0 : i32
    %c0_i32_0 = arith.constant 0 : i32
    %c0_i32_1 = arith.constant 0 : i32
    return %c0_i32, %c0_i32_0 : i32, i32
  }
  func.func @transform_2(%arg0: i32) -> (i32, i32) {
    %c0_i32 = arith.constant 0 : i32
    %c0_i32_0 = arith.constant 0 : i32
    %c0_i32_1 = arith.constant 0 : i32
    return %c0_i32, %c0_i32_0 : i32, i32
  }
  func.func @transform_3(%arg0: i32) -> (i32, i32) {
    %c0_i32 = arith.constant 0 : i32
    %c0_i32_0 = arith.constant 0 : i32
    %c0_i32_1 = arith.constant 0 : i32
    return %c0_i32, %c0_i32_0 : i32, i32
  }
  func.func @transform_4(%arg0: i32) -> (i32, i32) {
    %c0_i32 = arith.constant 0 : i32
    %c0_i32_0 = arith.constant 0 : i32
    %c0_i32_1 = arith.constant 0 : i32
    return %c0_i32, %c0_i32_0 : i32, i32
  }
  func.func @transform_5(%arg0: i32) -> (i32, i32) {
    %c0_i32 = arith.constant 0 : i32
    %c0_i32_0 = arith.constant 0 : i32
    %c0_i32_1 = arith.constant 0 : i32
    return %c0_i32, %c0_i32_0 : i32, i32
  }
  func.func @transform_6(%arg0: i32) -> (i32, i32) {
    %c0_i32 = arith.constant 0 : i32
    %c0_i32_0 = arith.constant 0 : i32
    %c0_i32_1 = arith.constant 0 : i32
    return %c0_i32, %c0_i32_0 : i32, i32
  }
  func.func @transform_7(%arg0: i32) -> (i32, i32) {
    %c0_i32 = arith.constant 0 : i32
    %c0_i32_0 = arith.constant 0 : i32
    %c0_i32_1 = arith.constant 0 : i32
    return %c0_i32, %c0_i32_0 : i32, i32
  }
  func.func @transform_8(%arg0: i32) -> (i32, i32) {
    %c0_i32 = arith.constant 0 : i32
    %c0_i32_0 = arith.constant 0 : i32
    %c0_i32_1 = arith.constant 0 : i32
    return %c0_i32, %c0_i32_0 : i32, i32
  }
  func.func @transform_9(%arg0: i32) -> (i32, i32) {
    %c0_i32 = arith.constant 0 : i32
    %c0_i32_0 = arith.constant 0 : i32
    return %arg0, %c0_i32 : i32, i32
  }
}

</mosaic_0001>

<bundles_post_ra>
// kernel: tpu_custom_call.1
= control target key start
LH: loop header
LB: loop body
LE: loop exit
PB: predicated region body
PF: predicated region fallthrough
CT: control target
= control target key end

     0   :  { %14 = vsyncpa [#allocation3], 0  ;;  %s935_s0 = inlined_call_operand.hbm [shape: f32[32,128], index: 0, kind: input, shape index: {}]   ;;  %s936_s1 = inlined_call_operand.hbm [shape: f32[128,128], index: 1, kind: input, shape index: {}]   ;;  %s937_s2 = inlined_call_operand.vmem [shape: f32[1,128], index: 2, kind: input, shape index: {}]   ;;  %s938_s3 = inlined_call_operand.vmem [shape: f32[1,128], index: 3, kind: input, shape index: {}]   ;;  %s939_s4 = inlined_call_operand.vmem [shape: f32[1,128], index: 4, kind: input, shape index: {}]   ;;  %s940_s5 = inlined_call_operand.hbm [shape: f32[128,128], index: 5, kind: input, shape index: {}]   ;;  %s941_s6 = inlined_call_operand.vmem [shape: f32[1,128], index: 6, kind: input, shape index: {}]   ;;  %s942_s7 = inlined_call_operand.vmem [shape: f32[1,128], index: 7, kind: input, shape index: {}]   ;;  %s943_s8 = inlined_call_operand.vmem [shape: f32[1,128], index: 8, kind: input, shape index: {}]   ;;  %s944_s9 = inlined_call_operand.hbm [shape: f32[32,128], index: 9, kind: output, shape index: {}]  }
   0x1   :  { %15 = vsyncpa [#allocation6], 0 }
   0x2   :  { %16 = vsyncpa [#allocation4], 0  ;;  %s770_s30 = smov [#allocation5]   ;;  %s771_s11 = smov [#allocation2]  }
   0x3   :  { %s34_s10 = sshll.u32 %s770_s30, 4  ;;  %s22_s12 = sshll.u32 %s771_s11, 4  ;;  %s35_s10 = int_to_ptr.vmem [resolvable:$true] %s34_s10  ;;  %s826_s12 = int_to_ptr.vmem [resolvable:$true] %s22_s12 }
   0x4   :  { %s676_s15 = scalar_lea.hbm %s936_s1, 2048 }
   0x5   :  { %p677_p0 = scmp.ne.s32.totalorder %s936_s1, %s676_s15  ;;  %p680_p1 = scmp.lt.u32.totalorder %s676_s15, %s936_s1 }
   0x7   :  { %p682_p2 = pnand %p680_p1, %p677_p0 }
   0x9   :  { %685 = shalt.err (!%p682_p2)
}
   0xa   :  { %s686_s20 = scalar_lea.vmem %s35_s10, 2048  ;;  %p691_p4 = scmp.lt.s32.totalorder %s35_s10, %s35_s10 }
   0xb   :  { %p687_p3 = scmp.ne.s32.totalorder %s35_s10, %s686_s20  ;;  %p692_p5 = scmp.lt.s32.totalorder %s686_s20, %s686_s20 }
   0xd   :  { %p693_p6 = por %p692_p5, %p691_p4 }
   0xf   :  { %p694_p7 = pnand %p693_p6, %p687_p3 }
  0x11   :  { %697 = shalt.err (!%p694_p7)
}
  0x12   :  { %s772_s21 = smov 128   ;;  %s773_s22 = smov 8  }
  0x13   :  { %40 = dma.hbm_to_vmem [thread:$0]  %s936_s1, 2048, %s35_s10, [#allocation6], %s772_s21, %s772_s21, %s773_s22  }
  0x14   :  { %s698_s27 = scalar_lea.hbm %s935_s0, 512 }
  0x15   :  { %p699_p8 = scmp.ne.s32.totalorder %s935_s0, %s698_s27  ;;  %p702_p9 = scmp.lt.u32.totalorder %s698_s27, %s935_s0 }
  0x17   :  { %p704_p10 = pnand %p702_p9, %p699_p8 }
  0x19   :  { %707 = shalt.err (!%p704_p10)
}
  0x1a   :  { %s708_s13 = scalar_lea.vmem %s826_s12, 512  ;;  %p713_p12 = scmp.lt.s32.totalorder %s826_s12, %s826_s12 }
  0x1b   :  { %p709_p11 = scmp.ne.s32.totalorder %s826_s12, %s708_s13  ;;  %p714_p13 = scmp.lt.s32.totalorder %s708_s13, %s708_s13 }
  0x1d   :  { %p715_p0 = por %p714_p13, %p713_p12 }
  0x1f   :  { %p716_p1 = pnand %p715_p0, %p709_p11 }
  0x21   :  { %719 = shalt.err (!%p716_p1)
}
  0x22   :  { %28 = dma.hbm_to_vmem [thread:$0]  %s935_s0, 512, %s826_s12, [#allocation3], %s772_s21, %s772_s21, %s773_s22  }
  0x23   :  { %s774_s14 = smov [#allocation7]   ;;  %s720_s18 = scalar_lea.hbm %s940_s5, 2048 }
  0x24   :  { %s52_s15 = sshll.u32 %s774_s14, 4  ;;  %p721_p2 = scmp.ne.s32.totalorder %s940_s5, %s720_s18  ;;  %s53_s15 = int_to_ptr.vmem [resolvable:$true] %s52_s15 }
  0x25   :  { %p724_p3 = scmp.lt.u32.totalorder %s720_s18, %s940_s5 }
  0x27   :  { %p726_p4 = pnand %p724_p3, %p721_p2 }
  0x29   :  { %729 = shalt.err (!%p726_p4)
}
  0x2a   :  { %s730_s25 = scalar_lea.vmem %s53_s15, 2048  ;;  %p735_p6 = scmp.lt.s32.totalorder %s53_s15, %s53_s15 }
  0x2b   :  { %p731_p5 = scmp.ne.s32.totalorder %s53_s15, %s730_s25  ;;  %p736_p7 = scmp.lt.s32.totalorder %s730_s25, %s730_s25 }
  0x2d   :  { %p737_p8 = por %p736_p7, %p735_p6 }
  0x2f   :  { %p738_p9 = pnand %p737_p8, %p731_p5 }
  0x31   :  { %741 = shalt.err (!%p738_p9)
}
  0x32   :  { %58 = dma.hbm_to_vmem [thread:$0]  %s940_s5, 2048, %s53_s15, [#allocation6], %s772_s21, %s772_s21, %s773_s22  }
  0x33   :  { %764 = dma.done.wait [#allocation3], 512  }
  0x34   :  { %765 = vsyncadd [#allocation3], 4294966784 }
  0x35   :  { %766 = dma.done.wait [#allocation6], 4096  }
  0x36   :  { %767 = vsyncadd [#allocation6], 4294963200  ;;  %v78_v0 = vld [vmem:[#allocation5] sm:$0xff]  ;;  %v79_v1 = vld [vmem:[#allocation5 + $0x8] sm:$0xff] }
  0x37   :  { %v80_v2 = vld [vmem:[#allocation5 + $0x10] sm:$0xff]  ;;  %v590_v3 = vpack.c.bf16 %v79_v1, %v78_v0  ;;  %v81_v4 = vld [vmem:[#allocation5 + $0x18] sm:$0xff]  ;;  %v82_v6 = vld [vmem:[#allocation5 + $0x20] sm:$0xff] }
  0x38   :  { %v594_v5 = vpack.c.bf16 %v81_v4, %v80_v2  ;;  %v83_v7 = vld [vmem:[#allocation5 + $0x28] sm:$0xff]  ;;  %v74_v9 = vld [vmem:[#allocation2] sm:$0xff]  ;;  %v84_v10 = vld [vmem:[#allocation5 + $0x30] sm:$0xff] }
  0x39   :  { %591 = vmatprep.subr.bf16.mxu0 %v590_v3  ;;  %v598_v8 = vpack.c.bf16 %v83_v7, %v82_v6  ;;  %v85_v11 = vld [vmem:[#allocation5 + $0x38] sm:$0xff]  ;;  %546 = vmatprep.mubr.f32.mxu0 %v74_v9  ;;  %v86_v13 = vld [vmem:[#allocation5 + $0x40] sm:$0xff]  ;;  %v87_v14 = vld [vmem:[#allocation5 + $0x48] sm:$0xff] }
  0x3a   :  { %593 = vmatpush3.bf16.msra.mxu0 %v590_v3  ;;  %v602_v12 = vpack.c.bf16 %v85_v11, %v84_v10  ;;  %v606_v15 = vpack.c.bf16 %v87_v14, %v86_v13  ;;  %v88_v16 = vld [vmem:[#allocation5 + $0x50] sm:$0xff]  ;;  %v89_v17 = vld [vmem:[#allocation5 + $0x58] sm:$0xff]  ;;  %v90_v19 = vld [vmem:[#allocation5 + $0x60] sm:$0xff] }
  0x3b   :  { %595 = vmatprep.subr.bf16.mxu0 %v594_v5  ;;  %v610_v18 = vpack.c.bf16 %v89_v17, %v88_v16  ;;  %v91_v20 = vld [vmem:[#allocation5 + $0x68] sm:$0xff]  ;;  %v92_v22 = vld [vmem:[#allocation5 + $0x70] sm:$0xff]  ;;  %v93_v23 = vld [vmem:[#allocation5 + $0x78] sm:$0xff] }
  0x3c   :  { %v614_v21 = vpack.c.bf16 %v91_v20, %v90_v19  ;;  %v618_v24 = vpack.c.bf16 %v93_v23, %v92_v22  ;;  %v75_v25 = vld [vmem:[#allocation2 + $0x8] sm:$0xff]  ;;  %v76_v26 = vld [vmem:[#allocation2 + $0x10] sm:$0xff]  ;;  %v77_v27 = vld [vmem:[#allocation2 + $0x18] sm:$0xff] }
  0x3d   :  { %v468_v28 = vld [vmem:[%s937_s2] ss:$0 sm:$0xff]  ;;  %v265_v41 = vld [vmem:[#allocation7 + $0x8] sm:$0xff]  ;;  %v266_v44 = vld [vmem:[#allocation7 + $0x10] sm:$0xff] }
  0x3e   :  { %597 = vmatpush3.bf16.msra.mxu0 %v594_v5  ;;  %v264_v40 = vld [vmem:[#allocation7] sm:$0xff]  ;;  %v267_v45 = vld [vmem:[#allocation7 + $0x18] sm:$0xff]  ;;  %v269_v48 = vld [vmem:[#allocation7 + $0x28] sm:$0xff] }
  0x3f   :  { %599 = vmatprep.subr.bf16.mxu0 %v598_v8  ;;  %v622_v43 = vpack.c.bf16 %v265_v41, %v264_v40  ;;  %v626_v46 = vpack.c.bf16 %v267_v45, %v266_v44  ;;  %v268_v47 = vld [vmem:[#allocation7 + $0x20] sm:$0xff]  ;;  %v270_v50 = vld [vmem:[#allocation7 + $0x30] sm:$0xff]  ;;  %v271_v51 = vld [vmem:[#allocation7 + $0x38] sm:$0xff] }
  0x40   :  { %v630_v49 = vpack.c.bf16 %v269_v48, %v268_v47  ;;  %v634_v52 = vpack.c.bf16 %v271_v51, %v270_v50  ;;  %v272_v53 = vld [vmem:[#allocation7 + $0x40] sm:$0xff]  ;;  %v273_v54 = vld [vmem:[#allocation7 + $0x48] sm:$0xff]  ;;  %v274_v56 = vld [vmem:[#allocation7 + $0x50] sm:$0xff] }
  0x41   :  { %623 = vmatprep.subr.bf16.mxu1 %v622_v43  ;;  %v638_v55 = vpack.c.bf16 %v273_v54, %v272_v53  ;;  %v275_v57 = vld [vmem:[#allocation7 + $0x58] sm:$0xff]  ;;  %v276_v59 = vld [vmem:[#allocation7 + $0x60] sm:$0xff]  ;;  %v277_v60 = vld [vmem:[#allocation7 + $0x68] sm:$0xff] }
  0x42   :  { %601 = vmatpush3.bf16.msra.mxu0 %v598_v8  ;;  %625 = vmatpush3.bf16.msra.mxu1 %v622_v43  ;;  %v642_v58 = vpack.c.bf16 %v275_v57, %v274_v56  ;;  %v278_v61 = vld [vmem:[#allocation7 + $0x70] sm:$0xff]  ;;  %v646_v62 = vpack.c.bf16 %v277_v60, %v276_v59  ;;  %v279_v63 = vld [vmem:[#allocation7 + $0x78] sm:$0xff]  ;;  %v470_v41 = vld [vmem:[%s939_s4] ss:$0 sm:$0xff] }
  0x43   :  { %603 = vmatprep.subr.bf16.mxu0 %v602_v12  ;;  %627 = vmatprep.subr.bf16.mxu1 %v626_v46  ;;  %v650_v0 = vpack.c.bf16 %v279_v63, %v278_v61 }
  0x46   :  { %605 = vmatpush3.bf16.msra.mxu0 %v602_v12  ;;  %629 = vmatpush3.bf16.msra.mxu1 %v626_v46 }
  0x47   :  { %607 = vmatprep.subr.bf16.mxu0 %v606_v15  ;;  %631 = vmatprep.subr.bf16.mxu1 %v630_v49 }
  0x4a   :  { %609 = vmatpush3.bf16.msra.mxu0 %v606_v15  ;;  %633 = vmatpush3.bf16.msra.mxu1 %v630_v49 }
  0x4b   :  { %611 = vmatprep.subr.bf16.mxu0 %v610_v18  ;;  %635 = vmatprep.subr.bf16.mxu1 %v634_v52 }
  0x4e   :  { %613 = vmatpush3.bf16.msra.mxu0 %v610_v18  ;;  %637 = vmatpush3.bf16.msra.mxu1 %v634_v52 }
  0x4f   :  { %615 = vmatprep.subr.bf16.mxu0 %v614_v21  ;;  %639 = vmatprep.subr.bf16.mxu1 %v638_v55 }
  0x52   :  { %617 = vmatpush3.bf16.msra.mxu0 %v614_v21  ;;  %641 = vmatpush3.bf16.msra.mxu1 %v638_v55 }
  0x53   :  { %619 = vmatprep.subr.bf16.mxu0 %v618_v24  ;;  %643 = vmatprep.subr.bf16.mxu1 %v642_v58 }
  0x56   :  { %621 = vmatpush3.bf16.msra.mxu0 %v618_v24  ;;  %645 = vmatpush3.bf16.msra.mxu1 %v642_v58 }
  0x57   :  { %647 = vmatprep.subr.bf16.mxu1 %v646_v62 }
  0x59   :  { %547 = vmatmul.mubr.f32.vlgmr.msra.gmra.mrb[0].mxu0 %v75_v25 }
  0x5a   :  { %549 = vmatprep.mubr.f32.mxu0 %v76_v26  ;;  %649 = vmatpush3.bf16.msra.mxu1 %v646_v62 }
  0x5b   :  { %651 = vmatprep.subr.bf16.mxu1 %v650_v0 }
  0x5d   :  { %550 = vmatmul.mubr.f32.gmra.mrb[2].mxu0 %v77_v27 }
  0x5e   :  { %653 = vmatpush3.bf16.msra.mxu1 %v650_v0 }
 0x12c   :  { %v548_v29 = vpop.f32.mrb[0].mxu0 }
 0x12d   :  { %v881_v30 = vadd.f32 %v548_v29, %v468_v28  ;;  %v167_v31 = vpop.f32.mrb[1].mxu0 }
 0x12e   :  { %v883_v32 = vadd.f32 %v468_v28, %v167_v31 }
 0x12f   :  { %188 = vadd.xlane.f32.xlu0 %v881_v30  ;;  %v199_v33 = vmul.f32 %v881_v30, %v881_v30 }
 0x130   :  { %v551_v34 = vpop.f32.mrb[2].mxu0  ;;  %v198_v37 = vmul.f32 %v883_v32, %v883_v32 }
 0x131   :  { %204 = vadd.xlane.f32.xlu1 %v199_v33  ;;  %v177_v35 = vpop.f32.mrb[3].mxu0  ;;  %v893_v38 = vadd.f32 %v551_v34, %v468_v28  ;;  %v469_v33 = vld [vmem:[%s938_s3] ss:$0 sm:$0xff] }
 0x132   :  { %v889_v36 = vadd.f32 %v468_v28, %v177_v35 }
 0x133   :  { %186 = vadd.xlane.f32.xlu0 %v883_v32  ;;  %v201_v42 = vmul.f32 %v893_v38, %v893_v38 }
 0x134   :  { %v200_v39 = vmul.f32 %v889_v36, %v889_v36 }
 0x135   :  { %202 = vadd.xlane.f32.xlu1 %v198_v37 }
 0x137   :  { %190 = vadd.xlane.f32.xlu0 %v889_v36 }
 0x139   :  { %192 = vadd.xlane.f32.xlu1 %v893_v38 }
 0x13b   :  { %206 = vadd.xlane.f32.xlu0 %v200_v39 }
 0x13d   :  { %208 = vadd.xlane.f32.xlu1 %v201_v42 }
 0x1bc   :  { %v189_v1 = vpop.xlane.xlu0 %188 }
 0x1bd   :  { %v195_v2 = vmul.f32 0.03125, %v189_v1 }
 0x1be   :  { %v205_v3 = vpop.xlane.xlu1 %204 }
 0x1bf   :  { %v215_v4 = vmul.f32 %v195_v2, %v195_v2  ;;  %v211_v5 = vmul.f32 0.03125, %v205_v3  ;;  %v223_v28 = vsub.f32 %v881_v30, %v195_v2 }
 0x1c0   :  { %v187_v6 = vpop.xlane.xlu0 %186 }
 0x1c1   :  { %v219_v7 = vsub.f32 %v211_v5, %v215_v4  ;;  %v194_v8 = vmul.f32 0.03125, %v187_v6 }
 0x1c2   :  { %v203_v9 = vpop.xlane.xlu1 %202 }
 0x1c3   :  { %v227_v10 = vadd.f32 1e-05, %v219_v7  ;;  %v214_v11 = vmul.f32 %v194_v8, %v194_v8  ;;  %v210_v12 = vmul.f32 0.03125, %v203_v9  ;;  %v222_v35 = vsub.f32 %v883_v32, %v194_v8 }
 0x1c4   :  { %v191_v13 = vpop.xlane.xlu0 %190 }
 0x1c5   :  { %660 = vrsqrt.f32 %v227_v10  ;;  %v218_v14 = vsub.f32 %v210_v12, %v214_v11  ;;  %v196_v15 = vmul.f32 0.03125, %v191_v13 }
 0x1c6   :  { %v193_v16 = vpop.xlane.xlu1 %192 }
 0x1c7   :  { %v226_v17 = vadd.f32 1e-05, %v218_v14  ;;  %v216_v18 = vmul.f32 %v196_v15, %v196_v15  ;;  %v197_v19 = vmul.f32 0.03125, %v193_v16  ;;  %v224_v43 = vsub.f32 %v889_v36, %v196_v15  ;;  %v471_v36 = vld [vmem:[%s941_s6] ss:$0 sm:$0xff] }
 0x1c8   :  { %v207_v20 = vpop.xlane.xlu0 %206 }
 0x1c9   :  { %662 = vrsqrt.f32 %v226_v17  ;;  %v212_v21 = vmul.f32 0.03125, %v207_v20  ;;  %v217_v23 = vmul.f32 %v197_v19, %v197_v19  ;;  %v225_v46 = vsub.f32 %v893_v38, %v197_v19 }
 0x1ca   :  { %v209_v22 = vpop.xlane.xlu1 %208 }
 0x1cb   :  { %v220_v24 = vsub.f32 %v212_v21, %v216_v18  ;;  %v213_v25 = vmul.f32 0.03125, %v209_v22 }
 0x1cd   :  { %v228_v26 = vadd.f32 1e-05, %v220_v24  ;;  %v221_v27 = vsub.f32 %v213_v25, %v217_v23 }
 0x1cf   :  { %v661_v29 = vpop.eup %660  ;;  %664 = vrsqrt.f32 %v228_v26  ;;  %v229_v31 = vadd.f32 1e-05, %v221_v27 }
 0x1d0   :  { %v235_v34 = vmul.f32 %v661_v29, %v223_v28 }
 0x1d1   :  { %666 = vrsqrt.f32 %v229_v31 }
 0x1d2   :  { %v246_v39 = vmul.f32 %v469_v33, %v235_v34 }
 0x1d3   :  { %v663_v37 = vpop.eup %662 }
 0x1d4   :  { %v234_v40 = vmul.f32 %v663_v37, %v222_v35  ;;  %v257_v30 = vadd.f32 %v470_v41, %v246_v39  ;;  %v472_v39 = vld [vmem:[%s942_s7] ss:$0 sm:$0xff]  ;;  %s775_s7 = smov [#allocation8]  }
 0x1d5   :  { %s455_s1 = sshll.u32 %s775_s7, 4  ;;  %s456_s1 = int_to_ptr.vmem [resolvable:$true] %s455_s1 }
 0x1d6   :  { %v245_v42 = vmul.f32 %v469_v33, %v234_v40  ;;  %v261_v50 = vmax.f32 %v257_v30, 0.0  ;;  %v473_v30 = vld [vmem:[%s943_s8] ss:$0 sm:$0xff]  ;;  %s742_s8 = scalar_lea.vmem %s456_s1, 512  ;;  %p747_p11 = scmp.lt.s32.totalorder %s456_s1, %s456_s1 }
 0x1d7   :  { %p743_p10 = scmp.ne.s32.totalorder %s456_s1, %s742_s8  ;;  %p748_p12 = scmp.lt.s32.totalorder %s742_s8, %s742_s8 }
 0x1d8   :  { %v256_v44 = vadd.f32 %v470_v41, %v245_v42 }
 0x1d9   :  { %v665_v45 = vpop.eup %664  ;;  %p749_p13 = por %p748_p12, %p747_p11 }
 0x1da   :  { %v260_v47 = vmax.f32 %v256_v44, 0.0  ;;  %v236_v48 = vmul.f32 %v665_v45, %v224_v43 }
 0x1db   :  { %v667_v49 = vpop.eup %666  ;;  %p750_p0 = pnand %p749_p13, %p743_p10 }
 0x1dc   :  { %584 = vmatprep.mubr.f32.mxu1 %v260_v47  ;;  %v247_v32 = vmul.f32 %v469_v33, %v236_v48  ;;  %v237_v51 = vmul.f32 %v667_v49, %v225_v46 }
 0x1dd   :  { %585 = vmatmul.mubr.f32.vlgmr.msra.gmra.mrb[0].mxu1 %v261_v50 }
 0x1de   :  { %v258_v52 = vadd.f32 %v470_v41, %v247_v32  ;;  %v248_v53 = vmul.f32 %v469_v33, %v237_v51 }
 0x1e0   :  { %v262_v54 = vmax.f32 %v258_v52, 0.0  ;;  %v259_v55 = vadd.f32 %v470_v41, %v248_v53 }
 0x1e2   :  { %587 = vmatprep.mubr.f32.mxu1 %v262_v54  ;;  %v263_v56 = vmax.f32 %v259_v55, 0.0 }
 0x1e4   :  { %588 = vmatmul.mubr.f32.gmra.mrb[2].mxu1 %v263_v56 }
 0x2b0   :  { %v586_v38 = vpop.f32.mrb[0].mxu1 }
 0x2b1   :  { %v359_v57 = vadd.f32 %v586_v38, %v471_v36  ;;  %v353_v58 = vpop.f32.mrb[1].mxu1 }
 0x2b2   :  { %v354_v59 = vadd.f32 %v471_v36, %v353_v58 }
 0x2b3   :  { %374 = vadd.xlane.f32.xlu1 %v359_v57  ;;  %v385_v60 = vmul.f32 %v359_v57, %v359_v57 }
 0x2b4   :  { %372 = vadd.xlane.f32.xlu0 %v354_v59  ;;  %v384_v61 = vmul.f32 %v354_v59, %v354_v59 }
 0x2b7   :  { %390 = vadd.xlane.f32.xlu1 %v385_v60  ;;  %v589_v62 = vpop.f32.mrb[2].mxu1 }
 0x2b8   :  { %v369_v63 = vadd.f32 %v589_v62, %v471_v36  ;;  %388 = vadd.xlane.f32.xlu0 %v384_v61  ;;  %v363_v0 = vpop.f32.mrb[3].mxu1 }
 0x2b9   :  { %v364_v1 = vadd.f32 %v471_v36, %v363_v0 }
 0x2ba   :  { %v387_v2 = vmul.f32 %v369_v63, %v369_v63 }
 0x2bb   :  { %378 = vadd.xlane.f32.xlu1 %v369_v63  ;;  %v386_v3 = vmul.f32 %v364_v1, %v364_v1 }
 0x2bc   :  { %376 = vadd.xlane.f32.xlu0 %v364_v1 }
 0x2bf   :  { %394 = vadd.xlane.f32.xlu1 %v387_v2 }
 0x2c0   :  { %392 = vadd.xlane.f32.xlu0 %v386_v3 }
 0x340   :  { %v375_v4 = vpop.xlane.xlu1 %374 }
 0x341   :  { %v381_v5 = vmul.f32 0.03125, %v375_v4  ;;  %v373_v6 = vpop.xlane.xlu0 %372 }
 0x342   :  { %v380_v7 = vmul.f32 0.03125, %v373_v6 }
 0x343   :  { %v401_v9 = vmul.f32 %v381_v5, %v381_v5  ;;  %v409_v34 = vsub.f32 %v359_v57, %v381_v5 }
 0x344   :  { %v391_v8 = vpop.xlane.xlu1 %390  ;;  %v400_v12 = vmul.f32 %v380_v7, %v380_v7  ;;  %v408_v37 = vsub.f32 %v354_v59, %v380_v7 }
 0x345   :  { %v397_v10 = vmul.f32 0.03125, %v391_v8  ;;  %v389_v11 = vpop.xlane.xlu0 %388 }
 0x346   :  { %v396_v13 = vmul.f32 0.03125, %v389_v11 }
 0x347   :  { %v405_v14 = vsub.f32 %v397_v10, %v401_v9 }
 0x348   :  { %v404_v15 = vsub.f32 %v396_v13, %v400_v12  ;;  %v379_v16 = vpop.xlane.xlu1 %378 }
 0x349   :  { %v413_v17 = vadd.f32 1e-05, %v405_v14  ;;  %v383_v18 = vmul.f32 0.03125, %v379_v16  ;;  %v377_v19 = vpop.xlane.xlu0 %376 }
 0x34a   :  { %v412_v20 = vadd.f32 1e-05, %v404_v15  ;;  %v382_v21 = vmul.f32 0.03125, %v377_v19 }
 0x34b   :  { %668 = vrsqrt.f32 %v413_v17  ;;  %v403_v23 = vmul.f32 %v383_v18, %v383_v18  ;;  %v411_v47 = vsub.f32 %v369_v63, %v383_v18 }
 0x34c   :  { %670 = vrsqrt.f32 %v412_v20  ;;  %v395_v22 = vpop.xlane.xlu1 %394  ;;  %v402_v26 = vmul.f32 %v382_v21, %v382_v21  ;;  %v410_v49 = vsub.f32 %v364_v1, %v382_v21 }
 0x34d   :  { %v399_v24 = vmul.f32 0.03125, %v395_v22  ;;  %v393_v25 = vpop.xlane.xlu0 %392 }
 0x34e   :  { %v398_v27 = vmul.f32 0.03125, %v393_v25 }
 0x34f   :  { %v407_v28 = vsub.f32 %v399_v24, %v403_v23 }
 0x350   :  { %v406_v29 = vsub.f32 %v398_v27, %v402_v26 }
 0x351   :  { %v415_v31 = vadd.f32 1e-05, %v407_v28 }
 0x352   :  { %v414_v33 = vadd.f32 1e-05, %v406_v29 }
 0x353   :  { %672 = vrsqrt.f32 %v415_v31 }
 0x354   :  { %674 = vrsqrt.f32 %v414_v33 }
 0x355   :  { %v669_v35 = vpop.eup %668 }
 0x356   :  { %v671_v40 = vpop.eup %670  ;;  %v421_v41 = vmul.f32 %v669_v35, %v409_v34 }
 0x357   :  { %v420_v42 = vmul.f32 %v671_v40, %v408_v37 }
 0x358   :  { %v432_v43 = vmul.f32 %v472_v39, %v421_v41 }
 0x359   :  { %v431_v44 = vmul.f32 %v472_v39, %v420_v42 }
 0x35a   :  { %v443_v45 = vadd.f32 %v473_v30, %v432_v43 }
 0x35b   :  { %v442_v46 = vadd.f32 %v473_v30, %v431_v44 }
 0x35c   :  { %447 = vst [vmem:[#allocation8 + $0x8] sm:$0xff] %v443_v45 }
 0x35d   :  { %v673_v48 = vpop.eup %672  ;;  %446 = vst [vmem:[#allocation8] sm:$0xff] %v442_v46 }
 0x35e   :  { %v675_v50 = vpop.eup %674  ;;  %v423_v32 = vmul.f32 %v673_v48, %v411_v47 }
 0x35f   :  { %v422_v51 = vmul.f32 %v675_v50, %v410_v49 }
 0x360   :  { %v434_v52 = vmul.f32 %v472_v39, %v423_v32 }
 0x361   :  { %v433_v53 = vmul.f32 %v472_v39, %v422_v51 }
 0x362   :  { %v445_v54 = vadd.f32 %v473_v30, %v434_v52 }
 0x363   :  { %v444_v55 = vadd.f32 %v473_v30, %v433_v53 }
 0x364   :  { %449 = vst [vmem:[#allocation8 + $0x18] sm:$0xff] %v445_v54 }
 0x365   :  { %448 = vst [vmem:[#allocation8 + $0x10] sm:$0xff] %v444_v55 }
 0x366   :  { %753 = shalt.err (!%p750_p0)
}
 0x367   :  { %s754_s15 = scalar_lea.hbm %s944_s9, 512 }
 0x368   :  { %p755_p1 = scmp.ne.s32.totalorder %s944_s9, %s754_s15  ;;  %p758_p2 = scmp.lt.u32.totalorder %s754_s15, %s944_s9 }
 0x36a   :  { %p760_p3 = pnand %p758_p2, %p755_p1 }
 0x36c   :  { %763 = shalt.err (!%p760_p3)
}
 0x36d   :  { %461 = dma.vmem_to_hbm [thread:$0]  %s456_s1, 512, %s944_s9, [#allocation4], %s772_s21, %s772_s21, %s773_s22  }
 0x36e   :  { %768 = dma.done.wait [#allocation4], 512  }
 0x36f   :  { %769 = vsyncadd [#allocation4], 4294966784 }
 0x370   :  { %465 = vsyncpa [#allocation3], 1 }
 0x371   :  { %466 = vsyncpa [#allocation6], 1 }
 0x372   :  { %467 = vsyncpa [#allocation4], 1 }

</bundles_post_ra>
